<compile_context>
chip_gen: v5e
topology: v5e:2x2
jax: 0.10.0
libtpu: 0.0.40
codegen_flags: <defaults>
</compile_context>

<pallas_src>
import functools

import jax
import jax.numpy as jnp
from jax import lax
from jax.experimental import pallas as pl
from jax.experimental.pallas import tpu as pltpu

_F32_EPS = 1.1920929e-07      # torch.finfo(torch.float32).eps  (Python float!)
_NEG_BIG = -1e30              # finite "-inf" used for padding / masking


# --------------------------------- kernels -----------------------------------

def _concrete_train_noise_kernel(logits_ref, uniform_ref, samples_ref, *, inv_tau, k):
    """Training branch with host-supplied U[0,1) noise (deterministic / testable)."""
    logits = logits_ref[...].astype(jnp.float32)               # (bm, D)

    def body(i, best):
        # torch.rand(...).clamp(min=eps, max=1): upper clamp is dead (u < 1).
        u = jnp.maximum(uniform_ref[i].astype(jnp.float32), _F32_EPS)
        gumbel = -jnp.log(-jnp.log(u))                         # (bm, D)
        noisy = (gumbel + logits) * inv_tau
        m = jnp.max(noisy, axis=-1, keepdims=True)
        e = jnp.exp(noisy - m)
        s = jnp.sum(e, axis=-1, keepdims=True)                 # (bm, 1)
        p = e * (1.0 / s)                                      # exact (bm,1) reciprocal
        return jnp.maximum(best, p)                            # running max over k

    best = lax.fori_loop(0, k, body, jnp.zeros_like(logits), unroll=True)
    # repeat_count = d // d == 1 in the reference, so the repeat is a no-op.
    samples_ref[...] = best.astype(samples_ref.dtype)


def _concrete_train_prng_kernel(seed_ref, logits_ref, samples_ref, *, inv_tau, k):
    """Training branch with U[0,1) drawn in-kernel by the TPU hardware PRNG
    (production path: no noise tensor ever touches HBM)."""
    # Deterministic per grid step regardless of which TensorCore runs it.
    pltpu.prng_seed(seed_ref[0], pl.program_id(0))
    logits = logits_ref[...].astype(jnp.float32)               # (bm, D)

    best = jnp.zeros_like(logits)
    for _ in range(k):   # Python loop: prng_random_bits is stateful (keep out of scan)
        bits = pltpu.bitcast(pltpu.prng_random_bits(logits.shape), jnp.uint32)
        # mantissa trick: top 23 random bits -> float in [1,2), shift to [0,1)
        u = pltpu.bitcast((bits >> 9) | 0x3F800000, jnp.float32) - 1.0
        u = jnp.maximum(u, _F32_EPS)
        gumbel = -jnp.log(-jnp.log(u))
        noisy = (gumbel + logits) * inv_tau
        m = jnp.max(noisy, axis=-1, keepdims=True)
        e = jnp.exp(noisy - m)
        s = jnp.sum(e, axis=-1, keepdims=True)
        best = jnp.maximum(best, e * (1.0 / s))
    samples_ref[...] = best.astype(samples_ref.dtype)


def _concrete_eval_kernel(logits_ref, discrete_ref, *, k):
    """Eval branch: hard mask of everything >= the k-th largest logit
    (torch tie semantics: ties at the threshold can yield > k ones)."""
    logits = logits_ref[...].astype(jnp.float32)               # (bm, D)
    bm = logits.shape[0]

    def body(_, carry):
        work, rem, thresh = carry
        cur = jnp.max(work, axis=-1, keepdims=True)            # (bm, 1)
        eq = work == cur
        cnt = jnp.sum(eq.astype(jnp.int32), axis=-1, keepdims=True)
        hit = (rem > 0) & (cnt >= rem)      # the k-th value lies in this tie group
        thresh = jnp.where(hit, cur, thresh)
        rem = jnp.where(rem > 0, rem - cnt, rem)
        work = jnp.where(eq, _NEG_BIG, work)
        return work, rem, thresh

    init = (logits,
            jnp.full((bm, 1), k, dtype=jnp.int32),
            jnp.full((bm, 1), _NEG_BIG, dtype=jnp.float32))
    _, _, thresh = lax.fori_loop(0, k, body, init, unroll=True)
    discrete_ref[...] = (logits >= thresh).astype(discrete_ref.dtype)


# --------------------------- tiling / padding helpers -------------------------

def _round_up(x, m):
    return -(-x // m) * m


def _vmem_budget_and_limit():
    """Per-generation pipeline budget + explicit scoped-VMEM limit."""
    try:
        vmem = int(pltpu.get_tpu_info().vmem_capacity_bytes)   # 128 MiB v5e/v6e, 64 MiB v7x
    except Exception:
        vmem = 64 << 20                                        # conservative (v7x-sized)
    budget = min(vmem // 4, 24 << 20)    # keep the whole double-buffered pipeline small
    limit = min(vmem // 2, 2 * budget)   # request this much scoped VMEM explicitly
    return budget, limit


def _pick_batch_block(b_pad, d_pad, n_operands, budget_bytes):
    """Largest batch tile (multiple of 8, divides b_pad) whose double-buffered
    pipeline (2 bufs x n_operands x bm x d_pad x 4B) fits the budget, capped so
    the 'parallel' grid has >= 2 steps whenever possible (v7x: 2 TensorCores)."""
    per_row = 2 * n_operands * d_pad * 4
    max_rows = max(8, budget_bytes // per_row)
    bm = min(b_pad, 4096, (max_rows // 8) * 8)
    if b_pad >= 16:
        bm = min(bm, (b_pad // 16) * 8)    # guarantee >= 2 grid steps
    bm = max(8, bm - (bm % 8))
    while b_pad % bm:
        bm -= 8
    return bm


def _pad_2d(x, b_pad, d_pad, value):
    b, d = x.shape
    if (b, d) == (b_pad, d_pad):
        return x
    return jnp.pad(x, ((0, b_pad - b), (0, d_pad - d)), constant_values=value)


# -------------------------------- wrappers ------------------------------------

def _sample_concrete_train_noise(logits, uniform, *, tau0, k):
    B, D = logits.shape
    assert uniform.shape == (k, B, D), uniform.shape
    b_pad, d_pad = _round_up(B, 8), _round_up(D, 128)
    budget, limit = _vmem_budget_and_limit()
    bm = _pick_batch_block(b_pad, d_pad, k + 2, budget)        # k noise slabs + logits + out

    logits_p = _pad_2d(logits, b_pad, d_pad, _NEG_BIG)
    if uniform.shape != (k, b_pad, d_pad):
        uniform = jnp.pad(uniform, ((0, 0), (0, b_pad - B), (0, d_pad - D)),
                          constant_values=0.5)

    kern = functools.partial(_concrete_train_noise_kernel,
                             inv_tau=1.0 / float(tau0), k=k)
    out = pl.pallas_call(
        kern,
        out_shape=jax.ShapeDtypeStruct((b_pad, d_pad), jnp.float32),
        grid=(b_pad // bm,),
        in_specs=[
            pl.BlockSpec((bm, d_pad), lambda i: (i, 0)),           # logits tile
            pl.BlockSpec((k, bm, d_pad), lambda i: (0, i, 0)),     # noise tile, k leading
        ],
        out_specs=pl.BlockSpec((bm, d_pad), lambda i: (i, 0)),
        compiler_params=pltpu.CompilerParams(
            dimension_semantics=("parallel",), vmem_limit_bytes=limit),
    )(logits_p, uniform)
    return out[:B, :D]


def _sample_concrete_train_prng(logits, seed, *, tau0, k):
    B, D = logits.shape
    b_pad, d_pad = _round_up(B, 8), _round_up(D, 128)
    budget, limit = _vmem_budget_and_limit()
    bm = _pick_batch_block(b_pad, d_pad, 2, budget)            # only logits + out stream

    logits_p = _pad_2d(logits, b_pad, d_pad, _NEG_BIG)
    seed_arr = jnp.asarray([seed], dtype=jnp.int32)

    kern = functools.partial(_concrete_train_prng_kernel,
                             inv_tau=1.0 / float(tau0), k=k)
    out = pl.pallas_call(
        kern,
        out_shape=jax.ShapeDtypeStruct((b_pad, d_pad), jnp.float32),
        grid=(b_pad // bm,),
        in_specs=[
            pl.BlockSpec(memory_space=pltpu.MemorySpace.SMEM),     # seed scalar
            pl.BlockSpec((bm, d_pad), lambda i: (i, 0)),
        ],
        out_specs=pl.BlockSpec((bm, d_pad), lambda i: (i, 0)),
        compiler_params=pltpu.CompilerParams(
            dimension_semantics=("parallel",), vmem_limit_bytes=limit),
    )(seed_arr, logits_p)
    return out[:B, :D]


def _sample_concrete_eval(logits, *, k):
    B, D = logits.shape
    b_pad, d_pad = _round_up(B, 8), _round_up(D, 128)
    budget, limit = _vmem_budget_and_limit()
    bm = _pick_batch_block(b_pad, d_pad, 2, budget)            # no noise operand -> bigger bm

    logits_p = _pad_2d(logits, b_pad, d_pad, _NEG_BIG)
    kern = functools.partial(_concrete_eval_kernel, k=k)
    out = pl.pallas_call(
        kern,
        out_shape=jax.ShapeDtypeStruct((b_pad, d_pad), jnp.float32),
        grid=(b_pad // bm,),
        in_specs=[pl.BlockSpec((bm, d_pad), lambda i: (i, 0))],
        out_specs=pl.BlockSpec((bm, d_pad), lambda i: (i, 0)),
        compiler_params=pltpu.CompilerParams(
            dimension_semantics=("parallel",), vmem_limit_bytes=limit),
    )(logits_p)
    return out[:B, :D]


def sample_concrete(logits, uniform=None, *, tau0, k, training=True, seed=0):
    """Pallas equivalent of SampleConcrete(tau0, k).forward(logits).

    training=True:
      * uniform given  -> (k, B, D) host-side U[0,1) draws (torch.rand
        equivalent); deterministic, runs in every execution mode.
      * uniform=None   -> noise generated in-kernel with the TPU hardware PRNG
        seeded from `seed` (production path; removes the noise HBM traffic).
    training=False: hard top-k mask (>= k-th largest logit, torch tie rules).
    """
    if training:
        if uniform is not None:
            return _sample_concrete_train_noise(logits, uniform, tau0=tau0, k=k)
        return _sample_concrete_train_prng(logits, seed, tau0=tau0, k=k)
    return _sample_concrete_eval(logits, k=k)


# ---------------------------------- demo --------------------------------------

if __name__ == "__main__":
    B, D, K = 24, 128, 4
    TAU0 = 0.5

    key = jax.random.PRNGKey(0)
    k_logits, k_noise = jax.random.split(key)
    logits = jax.random.normal(k_logits, (B, D), dtype=jnp.float32)
    # torch.rand(batch, k, d) equivalent, drawn host-side in (k, B, D) layout.
    uniform = jax.random.uniform(k_noise, (K, B, D), dtype=jnp.float32)

    samples = sample_concrete(logits, uniform, tau0=TAU0, k=K, training=True)
    discrete = sample_concrete(logits, tau0=TAU0, k=K, training=False)
    jax.block_until_ready((samples, discrete))

    # Pure-JAX references (same uniform noise -> exact functional reference).
    u_ref = jnp.clip(uniform, _F32_EPS, 1.0)
    gumbel_ref = -jnp.log(-jnp.log(u_ref))
    noisy_ref = (gumbel_ref + logits[None]) / TAU0
    samples_ref = jnp.max(jax.nn.softmax(noisy_ref, axis=-1), axis=0)
    thresh_ref = jnp.sort(logits, axis=1)[:, -K][:, None]
    disc_ref = (logits >= thresh_ref).astype(jnp.float32)

    assert samples.shape == (B, D) and discrete.shape == (B, D)
    assert bool(jnp.all(jnp.isfinite(samples)))
    assert bool(jnp.all(samples >= 0.0)) and bool(jnp.all(samples <= 1.0 + 1e-6))
    assert bool(jnp.allclose(samples, samples_ref, rtol=1e-5, atol=1e-6))
    assert bool(jnp.all(discrete == disc_ref))

    # Optional smoke test of the in-kernel TPU-PRNG training path (the
    # production path).  pltpu.prng_* only lowers via Mosaic, so skip it off
    # TPU / under interpret emulation; the host-noise check above remains the
    # authoritative correctness test.
    if jax.devices()[0].platform == "tpu":
        s_prng = None
        try:
            s_prng = sample_concrete(logits, tau0=TAU0, k=K, training=True, seed=42)
            jax.block_until_ready(s_prng)
        except Exception:
            s_prng = None   # PRNG primitives unavailable in this execution mode
        if s_prng is not None:
            assert s_prng.shape == (B, D)
            assert bool(jnp.all(jnp.isfinite(s_prng)))
            assert bool(jnp.all(s_prng >= 0.0)) and bool(jnp.all(s_prng <= 1.0 + 1e-6))

    print("KERNEL_OK")
</pallas_src>

<mosaic_0001>
module attributes {stable_mosaic.version = 11 : i64} {
  func.func @_concrete_train_noise_kernel(%arg0: i32, %arg1: memref<8x128xf32, #tpu.memory_space<vmem>>, %arg2: memref<4x8x128xf32, #tpu.memory_space<vmem>>, %arg3: memref<8x128xf32, #tpu.memory_space<vmem>>) attributes {dimension_semantics = [#tpu.dimension_semantics<parallel>], iteration_bounds = array<i64: 3>, scalar_prefetch = 0 : i64, scratch_operands = 0 : i64, tpu.core_type = #tpu.core_type<tc>, window_params = [{transform_indices = @transform_0, window_bounds = array<i64: 8, 128>}, {transform_indices = @transform_1, window_bounds = array<i64: 4, 8, 128>}, {transform_indices = @transform_2, window_bounds = array<i64: 8, 128>}]} {
    %c0 = arith.constant 0 : index
    %c0_0 = arith.constant 0 : index
    %0 = vector.load %arg1[%c0, %c0_0] : memref<8x128xf32, #tpu.memory_space<vmem>>, vector<8x128xf32>
    %cst = arith.constant 0.000000e+00 : f32
    %1 = vector.broadcast %cst : f32 to vector<8x128xf32>
    %c0_i32 = arith.constant 0 : i32
    %2 = arith.index_cast %c0_i32 : i32 to index
    %c0_1 = arith.constant 0 : index
    %c0_2 = arith.constant 0 : index
    %3 = vector.load %arg2[%2, %c0_1, %c0_2] : memref<4x8x128xf32, #tpu.memory_space<vmem>>, vector<1x8x128xf32>
    %4 = vector.shape_cast %3 : vector<1x8x128xf32> to vector<8x128xf32>
    %cst_3 = arith.constant 1.1920929E-7 : f32
    %5 = vector.broadcast %cst_3 : f32 to vector<8x128xf32>
    %6 = arith.maximumf %4, %5 : vector<8x128xf32>
    %7 = math.log %6 : vector<8x128xf32>
    %cst_4 = arith.constant 0.000000e+00 : f32
    %8 = vector.broadcast %cst_4 : f32 to vector<8x128xf32>
    %9 = arith.subf %8, %7 : vector<8x128xf32>
    %10 = math.log %9 : vector<8x128xf32>
    %cst_5 = arith.constant 0.000000e+00 : f32
    %11 = vector.broadcast %cst_5 : f32 to vector<8x128xf32>
    %12 = arith.subf %11, %10 : vector<8x128xf32>
    %13 = arith.addf %12, %0 : vector<8x128xf32>
    %cst_6 = arith.constant 2.000000e+00 : f32
    %14 = vector.broadcast %cst_6 : f32 to vector<8x128xf32>
    %15 = arith.mulf %13, %14 : vector<8x128xf32>
    %cst_7 = arith.constant dense<0xFF800000> : vector<8xf32>
    %16 = vector.multi_reduction <maximumf>, %15, %cst_7 [1] : vector<8x128xf32> to vector<8xf32>
    %17 = vector.shape_cast %16 : vector<8xf32> to vector<8x1xf32>
    %18 = vector.broadcast %17 : vector<8x1xf32> to vector<8x128xf32>
    %19 = arith.subf %15, %18 : vector<8x128xf32>
    %20 = math.exp %19 : vector<8x128xf32>
    %cst_8 = arith.constant dense<0.000000e+00> : vector<8xf32>
    %21 = vector.multi_reduction <add>, %20, %cst_8 [1] : vector<8x128xf32> to vector<8xf32>
    %22 = vector.shape_cast %21 : vector<8xf32> to vector<8x1xf32>
    %cst_9 = arith.constant 1.000000e+00 : f32
    %23 = vector.broadcast %cst_9 : f32 to vector<8x1xf32>
    %24 = arith.divf %23, %22 : vector<8x1xf32>
    %25 = vector.broadcast %24 : vector<8x1xf32> to vector<8x128xf32>
    %26 = arith.mulf %20, %25 : vector<8x128xf32>
    %27 = arith.maximumf %1, %26 : vector<8x128xf32>
    %c1_i32 = arith.constant 1 : i32
    %28 = arith.index_cast %c1_i32 : i32 to index
    %c0_10 = arith.constant 0 : index
    %c0_11 = arith.constant 0 : index
    %29 = vector.load %arg2[%28, %c0_10, %c0_11] : memref<4x8x128xf32, #tpu.memory_space<vmem>>, vector<1x8x128xf32>
    %30 = vector.shape_cast %29 : vector<1x8x128xf32> to vector<8x128xf32>
    %cst_12 = arith.constant 1.1920929E-7 : f32
    %31 = vector.broadcast %cst_12 : f32 to vector<8x128xf32>
    %32 = arith.maximumf %30, %31 : vector<8x128xf32>
    %33 = math.log %32 : vector<8x128xf32>
    %cst_13 = arith.constant 0.000000e+00 : f32
    %34 = vector.broadcast %cst_13 : f32 to vector<8x128xf32>
    %35 = arith.subf %34, %33 : vector<8x128xf32>
    %36 = math.log %35 : vector<8x128xf32>
    %cst_14 = arith.constant 0.000000e+00 : f32
    %37 = vector.broadcast %cst_14 : f32 to vector<8x128xf32>
    %38 = arith.subf %37, %36 : vector<8x128xf32>
    %39 = arith.addf %38, %0 : vector<8x128xf32>
    %cst_15 = arith.constant 2.000000e+00 : f32
    %40 = vector.broadcast %cst_15 : f32 to vector<8x128xf32>
    %41 = arith.mulf %39, %40 : vector<8x128xf32>
    %cst_16 = arith.constant dense<0xFF800000> : vector<8xf32>
    %42 = vector.multi_reduction <maximumf>, %41, %cst_16 [1] : vector<8x128xf32> to vector<8xf32>
    %43 = vector.shape_cast %42 : vector<8xf32> to vector<8x1xf32>
    %44 = vector.broadcast %43 : vector<8x1xf32> to vector<8x128xf32>
    %45 = arith.subf %41, %44 : vector<8x128xf32>
    %46 = math.exp %45 : vector<8x128xf32>
    %cst_17 = arith.constant dense<0.000000e+00> : vector<8xf32>
    %47 = vector.multi_reduction <add>, %46, %cst_17 [1] : vector<8x128xf32> to vector<8xf32>
    %48 = vector.shape_cast %47 : vector<8xf32> to vector<8x1xf32>
    %cst_18 = arith.constant 1.000000e+00 : f32
    %49 = vector.broadcast %cst_18 : f32 to vector<8x1xf32>
    %50 = arith.divf %49, %48 : vector<8x1xf32>
    %51 = vector.broadcast %50 : vector<8x1xf32> to vector<8x128xf32>
    %52 = arith.mulf %46, %51 : vector<8x128xf32>
    %53 = arith.maximumf %27, %52 : vector<8x128xf32>
    %c2_i32 = arith.constant 2 : i32
    %54 = arith.index_cast %c2_i32 : i32 to index
    %c0_19 = arith.constant 0 : index
    %c0_20 = arith.constant 0 : index
    %55 = vector.load %arg2[%54, %c0_19, %c0_20] : memref<4x8x128xf32, #tpu.memory_space<vmem>>, vector<1x8x128xf32>
    %56 = vector.shape_cast %55 : vector<1x8x128xf32> to vector<8x128xf32>
    %cst_21 = arith.constant 1.1920929E-7 : f32
    %57 = vector.broadcast %cst_21 : f32 to vector<8x128xf32>
    %58 = arith.maximumf %56, %57 : vector<8x128xf32>
    %59 = math.log %58 : vector<8x128xf32>
    %cst_22 = arith.constant 0.000000e+00 : f32
    %60 = vector.broadcast %cst_22 : f32 to vector<8x128xf32>
    %61 = arith.subf %60, %59 : vector<8x128xf32>
    %62 = math.log %61 : vector<8x128xf32>
    %cst_23 = arith.constant 0.000000e+00 : f32
    %63 = vector.broadcast %cst_23 : f32 to vector<8x128xf32>
    %64 = arith.subf %63, %62 : vector<8x128xf32>
    %65 = arith.addf %64, %0 : vector<8x128xf32>
    %cst_24 = arith.constant 2.000000e+00 : f32
    %66 = vector.broadcast %cst_24 : f32 to vector<8x128xf32>
    %67 = arith.mulf %65, %66 : vector<8x128xf32>
    %cst_25 = arith.constant dense<0xFF800000> : vector<8xf32>
    %68 = vector.multi_reduction <maximumf>, %67, %cst_25 [1] : vector<8x128xf32> to vector<8xf32>
    %69 = vector.shape_cast %68 : vector<8xf32> to vector<8x1xf32>
    %70 = vector.broadcast %69 : vector<8x1xf32> to vector<8x128xf32>
    %71 = arith.subf %67, %70 : vector<8x128xf32>
    %72 = math.exp %71 : vector<8x128xf32>
    %cst_26 = arith.constant dense<0.000000e+00> : vector<8xf32>
    %73 = vector.multi_reduction <add>, %72, %cst_26 [1] : vector<8x128xf32> to vector<8xf32>
    %74 = vector.shape_cast %73 : vector<8xf32> to vector<8x1xf32>
    %cst_27 = arith.constant 1.000000e+00 : f32
    %75 = vector.broadcast %cst_27 : f32 to vector<8x1xf32>
    %76 = arith.divf %75, %74 : vector<8x1xf32>
    %77 = vector.broadcast %76 : vector<8x1xf32> to vector<8x128xf32>
    %78 = arith.mulf %72, %77 : vector<8x128xf32>
    %79 = arith.maximumf %53, %78 : vector<8x128xf32>
    %c3_i32 = arith.constant 3 : i32
    %80 = arith.index_cast %c3_i32 : i32 to index
    %c0_28 = arith.constant 0 : index
    %c0_29 = arith.constant 0 : index
    %81 = vector.load %arg2[%80, %c0_28, %c0_29] : memref<4x8x128xf32, #tpu.memory_space<vmem>>, vector<1x8x128xf32>
    %82 = vector.shape_cast %81 : vector<1x8x128xf32> to vector<8x128xf32>
    %cst_30 = arith.constant 1.1920929E-7 : f32
    %83 = vector.broadcast %cst_30 : f32 to vector<8x128xf32>
    %84 = arith.maximumf %82, %83 : vector<8x128xf32>
    %85 = math.log %84 : vector<8x128xf32>
    %cst_31 = arith.constant 0.000000e+00 : f32
    %86 = vector.broadcast %cst_31 : f32 to vector<8x128xf32>
    %87 = arith.subf %86, %85 : vector<8x128xf32>
    %88 = math.log %87 : vector<8x128xf32>
    %cst_32 = arith.constant 0.000000e+00 : f32
    %89 = vector.broadcast %cst_32 : f32 to vector<8x128xf32>
    %90 = arith.subf %89, %88 : vector<8x128xf32>
    %91 = arith.addf %90, %0 : vector<8x128xf32>
    %cst_33 = arith.constant 2.000000e+00 : f32
    %92 = vector.broadcast %cst_33 : f32 to vector<8x128xf32>
    %93 = arith.mulf %91, %92 : vector<8x128xf32>
    %cst_34 = arith.constant dense<0xFF800000> : vector<8xf32>
    %94 = vector.multi_reduction <maximumf>, %93, %cst_34 [1] : vector<8x128xf32> to vector<8xf32>
    %95 = vector.shape_cast %94 : vector<8xf32> to vector<8x1xf32>
    %96 = vector.broadcast %95 : vector<8x1xf32> to vector<8x128xf32>
    %97 = arith.subf %93, %96 : vector<8x128xf32>
    %98 = math.exp %97 : vector<8x128xf32>
    %cst_35 = arith.constant dense<0.000000e+00> : vector<8xf32>
    %99 = vector.multi_reduction <add>, %98, %cst_35 [1] : vector<8x128xf32> to vector<8xf32>
    %100 = vector.shape_cast %99 : vector<8xf32> to vector<8x1xf32>
    %cst_36 = arith.constant 1.000000e+00 : f32
    %101 = vector.broadcast %cst_36 : f32 to vector<8x1xf32>
    %102 = arith.divf %101, %100 : vector<8x1xf32>
    %103 = vector.broadcast %102 : vector<8x1xf32> to vector<8x128xf32>
    %104 = arith.mulf %98, %103 : vector<8x128xf32>
    %105 = arith.maximumf %79, %104 : vector<8x128xf32>
    %c4_i32 = arith.constant 4 : i32
    %c0_37 = arith.constant 0 : index
    %c0_38 = arith.constant 0 : index
    %106 = vector.load %arg3[%c0_37, %c0_38] : memref<8x128xf32, #tpu.memory_space<vmem>>, vector<8x128xf32>
    tpu.vector_store %arg3[%c0_37, %c0_38], %105 {strides = array<i32>} : memref<8x128xf32, #tpu.memory_space<vmem>>, vector<8x128xf32>,
    return
  }
  func.func @transform_0(%arg0: i32) -> (i32, i32) {
    %c0_i32 = arith.constant 0 : i32
    %c0_i32_0 = arith.constant 0 : i32
    return %arg0, %c0_i32 : i32, i32
  }
  func.func @transform_1(%arg0: i32) -> (i32, i32, i32) {
    %c0_i32 = arith.constant 0 : i32
    %c0_i32_0 = arith.constant 0 : i32
    %c0_i32_1 = arith.constant 0 : i32
    return %c0_i32, %arg0, %c0_i32_0 : i32, i32, i32
  }
  func.func @transform_2(%arg0: i32) -> (i32, i32) {
    %c0_i32 = arith.constant 0 : i32
    %c0_i32_0 = arith.constant 0 : i32
    return %arg0, %c0_i32 : i32, i32
  }
}

</mosaic_0001>

<bundles_post_ra>
// kernel: tpu_custom_call.1
= control target key start
LH: loop header
LB: loop body
LE: loop exit
PB: predicated region body
PF: predicated region fallthrough
CT: control target
= control target key end

     0   :  { %7 = vsyncpa [#allocation3], 0  ;;  %s894_s0 = inlined_call_operand.hbm [shape: f32[24,128], index: 0, kind: input, shape index: {}]   ;;  %s895_s1 = inlined_call_operand.hbm [shape: f32[4,24,128], index: 1, kind: input, shape index: {}]   ;;  %s896_s2 = inlined_call_operand.hbm [shape: f32[24,128], index: 2, kind: output, shape index: {}]  }
   0x1   :  { %9 = vsyncpa [#allocation3 + $0x1], 0 }
   0x2   :  { %10 = vsyncpa [#allocation6], 0 }
   0x3   :  { %12 = vsyncpa [#allocation6 + $0x1], 0 }
   0x4   :  { %13 = vsyncpa [#allocation4], 0 }
   0x5   :  { %15 = vsyncpa [#allocation4 + $0x1], 0  ;;  %s706_s9 = smov 0   ;;  %s708_s10 = smov 0  }
   0x6   :  { %s710_s11 = smov 0   ;;  %s712_s12 = smov 0  }
   0x7 LB: > { %s727_s13 = sadd.s32 4294967295, %s686_s12   ;;  %s452_s14 = sadd.s32 4294967294, %s686_s12   ;;  %s686_s12 = sphi %s712_s12, %s910_s12   ;;  %s682_s11 = sphi %s710_s11, %s909_s11   ;;  %s678_s10 = sphi %s708_s10, %s908_s10   ;;  %s674_s9 = sphi %s706_s9, %s907_s9  }
   0x8   : > { %s731_s15 = sadd.s32 1, %s686_s12   ;;  %s28_s16 = sadd.s32 1, %s682_s11 }
   0x9   : > { %s25_s17 = ssub.s32 %s686_s12, %s731_s15  ;;  %p35_p0 = scmp.ne.s32.totalorder %s682_s11, %s678_s10 }
   0xa   : > { %p26_p1 = scmp.eq.s32.totalorder %s25_s17, 0  ;;  %p36_p2 = scmp.eq.s32.totalorder %s686_s12, 0 }
   0xb   : > { %p41_p3 = scmp.ne.s32.totalorder %s678_s10, %s674_s9  ;;  %p42_p4 = scmp.eq.s32.totalorder %s727_s13, 0 }
   0xc   : > { %s743_s18 = scalar_select %p26_p1, %s682_s11, %s28_s16  }
   0xd   : > { %p745_p5 = por %p36_p2, %p35_p0  ;;  %p749_p6 = por %p42_p4, %p41_p3 }
   0xe   : > { %p91_p7 = scmp.eq.s32.totalorder %s727_s13, 2  ;;  %p97_p8 = scmp.eq.s32.totalorder %s452_s14, 2 }
   0xf   : > { %p487_p9 = scmp.lt.s32.totalorder %s686_s12, 3  ;;  %s764_s23 = sand.u32 1, %s682_s11  }
  0x10   : > { %p755_p10 = por %p91_p7, %p35_p0  ;;  %p759_p11 = por %p97_p8, %p41_p3 }
  0x11   : > { %s456_s24 = sshll.u32 %s686_s12, 3  ;;  %s455_s25 = sshll.u32 %s764_s23, 3 }
  0x12   : > { %s125_s28 = scalar_lea.hbm %s894_s0, %s456_s24  ;;  %s121_s30 = scalar_lea.vmem [#allocation2], %s455_s25 }
  0x13   : > { %s127_s29 = sshll.u32 %s125_s28, 4  ;;  %s129_s3 = sshll.u32 %s121_s30, 4  ;;  %s128_s29 = int_to_ptr.hbm [resolvable:$true] %s127_s29  ;;  %s130_s3 = int_to_ptr.vmem [resolvable:$true] %s129_s3 }
  0x14   : > { %p773_p12 = pnand %p487_p9, %p745_p5  ;;  %s457_s5 = sshll.u32 %s764_s23, 5 }
  0x15   : > { %s144_s8 = scalar_lea.hbm %s895_s1, %s456_s24  ;;  %s118_s14 = scalar_lea.sflag [#allocation3], %s764_s23 }
  0x16   : > { %s556_s16 = sshra.s32 %s128_s29, 4  ;;  %p560_p0 = pneg %p773_p12  ;;  %s557_s16 = int_to_ptr.hbm [resolvable:$true] %s556_s16 }
  0x17   : > { %s558_s17 = scalar_lea.hbm %s557_s16, 8  ;;  %s563_s26 = scalar_lea.hbm %s894_s0, 24 }
  0x18   : > { %p559_p13 = scmp.ne.s32.totalorder %s557_s16, %s558_s17  ;;  %p564_p3 = scmp.lt.s32.totalorder %s557_s16, %s894_s0 }
  0x19   : > { %p565_p4 = scmp.lt.s32.totalorder %s563_s26, %s558_s17 }
  0x1a   : > { %p561_p1 = pnand %p560_p0, %p559_p13 }
  0x1b   : > { %p566_p5 = por %p565_p4, %p564_p3 }
  0x1c   : > { %p562_p2 = pneg %p561_p1 }
  0x1e   : > { %p567_p7 = pnand %p566_p5, %p562_p2 }
  0x20   : > { %570 = shalt.err (!%p567_p7)
}
  0x21   : > { %479 = dma.hbm_to_vmem [thread:$0]  (!%p773_p12), %s128_s29, 128, %s130_s3, %s118_s14  }
  0x22   : > { %s145_s24 = sshll.u32 %s144_s8, 4  ;;  %p459_p8 = scmp.ge.s32.totalorder %s686_s12, 1  ;;  %s146_s24 = int_to_ptr.hbm [resolvable:$true] %s145_s24 }
  0x23   : > { %p155_p9 = scmp.lt.s32.totalorder %s686_s12, 4  ;;  %s140_s30 = scalar_lea.vmem [#allocation5], %s457_s5 }
  0x24   : > { %s147_s6 = sshll.u32 %s140_s30, 4  ;;  %s137_s16 = scalar_lea.sflag [#allocation6], %s764_s23  ;;  %s148_s6 = int_to_ptr.vmem [resolvable:$true] %s147_s6 }
  0x25   : > { %p797_p13 = pnand %p459_p8, %p155_p9  ;;  %s586_s17 = sshra.s32 %s146_s24, 4  ;;  %s587_s17 = int_to_ptr.hbm [resolvable:$true] %s586_s17 }
  0x26   : > { %s588_s19 = scalar_lea.hbm %s587_s17, 32  ;;  %s593_s8 = scalar_lea.hbm %s895_s1, 96 }
  0x27   : > { %p589_p1 = scmp.ne.s32.totalorder %s587_s17, %s588_s19  ;;  %p594_p4 = scmp.lt.s32.totalorder %s587_s17, %s895_s1 }
  0x28   : > { %p595_p5 = scmp.lt.s32.totalorder %s593_s8, %s588_s19 }
  0x29   : > { %p591_p2 = pnand %p589_p1, %p560_p0 }
  0x2a   : > { %p596_p7 = por %p595_p5, %p594_p4 }
  0x2b   : > { %p592_p3 = pneg %p591_p2 }
  0x2d   : > { %p597_p8 = pnand %p596_p7, %p592_p3 }
  0x2f   : > { %600 = shalt.err (!%p597_p8)
}
  0x30   : > { %s688_s23 = smov 384   ;;  %s689_s25 = smov 128  }
  0x31   : > { %s690_s26 = smov 8   ;;  %159 = sbr.rel (%p797_p13) target bundleno = 367 (0x16f), region = 28 }
  0x32   : > { %482 = dma.hbm_to_vmem [thread:$0]  (!%p773_p12), %s146_s24, 512, %s148_s6, %s137_s16, %s688_s23, %s689_s25, %s690_s26  }
  0x33   : > { %s816_s27 = sand.u32 (!%p797_p13), 1, %s678_s10  }
  0x34   : > { %s460_s28 = sshll.u32 (!%p797_p13), %s816_s27, 3  ;;  %s162_s30 = scalar_lea.sflag (!%p797_p13), [#allocation3], %s816_s27 }
  0x35   : > { %s822_s17 = scalar_lea.vmem (!%p797_p13), [#allocation2], %s460_s28 }
  0x36   : > { %661 = dma.done.wait (%p749_p6), %s162_s30, 128  }
  0x37   : > { %663 = vsyncadd (%p749_p6), %s162_s30, 4294967168  ;;  %s461_s4 = sshll.u32 %s816_s27, 5  ;;  %s172_s24 = scalar_lea.sflag [#allocation6], %s816_s27 }
  0x38   : > { %s175_s6 = scalar_lea.vmem [#allocation5], %s461_s4 }
  0x39   : > { %665 = dma.done.wait (%p749_p6), %s172_s24, 512  }
  0x3a   : > { %667 = vsyncadd (%p749_p6), %s172_s24, 4294966784  ;;  %v464_v0 = vld [vmem:[%s175_s6 + $0x10] sm:$0xff]  ;;  %v203_v1 = vld [vmem:[%s175_s6] sm:$0xff]  ;;  %s467_s20 = sshll.u32 %s727_s13, 3  ;;  %s201_s13 = scalar_lea.vmem [#allocation7], %s460_s28 }
  0x3b   : > { %v274_v2 = vmax.f32 %v464_v0, 1.1920929e-07  ;;  %v204_v3 = vmax.f32 %v203_v1, 1.1920929e-07  ;;  %v465_v4 = vld [vmem:[%s175_s6 + $0x18] sm:$0xff]  ;;  %v463_v5 = vld [vmem:[%s175_s6 + $0x8] sm:$0xff]  ;;  %s354_s19 = scalar_lea.hbm %s896_s2, %s467_s20  ;;  %s356_s29 = sshll.u32 %s201_s13, 4  ;;  %s357_s29 = int_to_ptr.vmem [resolvable:$true] %s356_s29 }
  0x3c   : > { %v309_v6 = vmax.f32 %v465_v4, 1.1920929e-07  ;;  %v239_v7 = vmax.f32 %v463_v5, 1.1920929e-07  ;;  %v202_v24 = vld [vmem:[%s822_s17] sm:$0xff]  ;;  %s358_s3 = sshll.u32 %s354_s19, 4  ;;  %s344_s8 = scalar_lea.sflag [#allocation4], %s816_s27  ;;  %s359_s3 = int_to_ptr.hbm [resolvable:$true] %s358_s3 }
  0x3d   : > { %524 = vlog2.f32 %v274_v2  ;;  %s630_s5 = sshra.s32 %s359_s3, 4  ;;  %s636_s26 = scalar_lea.hbm %s896_s2, 24  ;;  %s631_s5 = int_to_ptr.hbm [resolvable:$true] %s630_s5 }
  0x3e   : > { %526 = vlog2.f32 %v204_v3  ;;  %s632_s14 = scalar_lea.hbm %s631_s5, 8  ;;  %p637_p9 = scmp.lt.s32.totalorder %s631_s5, %s896_s2 }
  0x3f   : > { %528 = vlog2.f32 %v309_v6  ;;  %p633_p6 = scmp.ne.s32.totalorder %s631_s5, %s632_s14  ;;  %p638_p13 = scmp.lt.s32.totalorder %s636_s26, %s632_s14 }
  0x40   : > { %530 = vlog2.f32 %v239_v7 }
  0x41   : > { %p634_p12 = pnand %p633_p6, %p755_p10  ;;  %p639_p1 = por %p638_p13, %p637_p9 }
  0x43   : > { %v525_v8 = vpop.eup %524  ;;  %p635_p0 = pneg %p634_p12 }
  0x44   : > { %v527_v9 = vpop.eup %526  ;;  %v276_v10 = vmul.f32 0.6931472, %v525_v8 }
  0x45   : > { %v529_v11 = vpop.eup %528  ;;  %v206_v12 = vmul.f32 0.6931472, %v527_v9  ;;  %p640_p2 = pnand %p639_p1, %p635_p0 }
  0x46   : > { %v531_v13 = vpop.eup %530  ;;  %v277_v14 = vsub.f32 0.0, %v276_v10  ;;  %v311_v15 = vmul.f32 0.6931472, %v529_v11 }
  0x47   : > { %v207_v16 = vsub.f32 0.0, %v206_v12  ;;  %v241_v17 = vmul.f32 0.6931472, %v531_v13 }
  0x48   : > { %532 = vlog2.f32 %v277_v14  ;;  %v312_v18 = vsub.f32 0.0, %v311_v15 }
  0x49   : > { %534 = vlog2.f32 %v207_v16  ;;  %v242_v19 = vsub.f32 0.0, %v241_v17 }
  0x4a   : > { %536 = vlog2.f32 %v312_v18 }
  0x4b   : > { %538 = vlog2.f32 %v242_v19 }
  0x4e   : > { %v533_v20 = vpop.eup %532 }
  0x4f   : > { %v535_v21 = vpop.eup %534  ;;  %v279_v22 = vmul.f32 0.6931472, %v533_v20 }
  0x50   : > { %v537_v23 = vpop.eup %536  ;;  %v209_v25 = vmul.f32 0.6931472, %v535_v21 }
  0x51   : > { %v539_v26 = vpop.eup %538  ;;  %v280_v27 = vsub.f32 0.0, %v279_v22  ;;  %v314_v28 = vmul.f32 0.6931472, %v537_v23 }
  0x52   : > { %v210_v29 = vsub.f32 0.0, %v209_v25  ;;  %v244_v30 = vmul.f32 0.6931472, %v539_v26 }
  0x53   : > { %v281_v31 = vadd.f32 %v280_v27, %v202_v24  ;;  %v315_v32 = vsub.f32 0.0, %v314_v28 }
  0x54   : > { %v211_v33 = vadd.f32 %v210_v29, %v202_v24  ;;  %v245_v34 = vsub.f32 0.0, %v244_v30 }
  0x55   : > { %v282_v35 = vmul.f32 2.0, %v281_v31  ;;  %v316_v37 = vadd.f32 %v315_v32, %v202_v24 }
  0x56   : > { %v212_v36 = vmul.f32 2.0, %v211_v33  ;;  %v246_v38 = vadd.f32 %v245_v34, %v202_v24 }
  0x57   : > { %283 = vmax.xlane.f32.xlu1 %v282_v35  ;;  %v317_v39 = vmul.f32 2.0, %v316_v37 }
  0x58   : > { %213 = vmax.xlane.f32.xlu0 %v212_v36  ;;  %v247_v40 = vmul.f32 2.0, %v246_v38 }
  0x5f   : > { %318 = vmax.xlane.f32.xlu1 %v317_v39 }
  0x60   : > { %248 = vmax.xlane.f32.xlu0 %v247_v40 }
  0xca   : > { %v284_v41 = vpop.xlane.xlu1 %283 }
  0xcb   : > { %v285_v42 = vsub.f32 %v282_v35, %v284_v41  ;;  %v214_v43 = vpop.xlane.xlu0 %213 }
  0xcc   : > { %v215_v44 = vsub.f32 %v212_v36, %v214_v43 }
  0xcd   : > { %v286_v45 = vmul.f32 1.442695, %v285_v42 }
  0xce   : > { %v216_v46 = vmul.f32 1.442695, %v215_v44 }
  0xcf   : > { %540 = vpow2.f32 %v286_v45 }
  0xd0   : > { %542 = vpow2.f32 %v216_v46 }
  0xd2   : > { %v319_v47 = vpop.xlane.xlu1 %318 }
  0xd3   : > { %v320_v48 = vsub.f32 %v317_v39, %v319_v47  ;;  %v249_v49 = vpop.xlane.xlu0 %248 }
  0xd4   : > { %v250_v50 = vsub.f32 %v247_v40, %v249_v49 }
  0xd5   : > { %v835_v51 = vpop.eup %540  ;;  %v321_v52 = vmul.f32 1.442695, %v320_v48 }
  0xd6   : > { %v543_v53 = vpop.eup %542  ;;  %v251_v54 = vmul.f32 1.442695, %v250_v50  ;;  %288 = vadd.xlane.f32.xlu0 %v835_v51 }
  0xd7   : > { %544 = vpow2.f32 %v321_v52  ;;  %218 = vadd.xlane.f32.xlu2 %v543_v53 }
  0xd8   : > { %546 = vpow2.f32 %v251_v54 }
  0xdd   : > { %v838_v55 = vpop.eup %544 }
  0xde   : > { %v840_v56 = vpop.eup %546  ;;  %323 = vadd.xlane.f32.xlu1 %v838_v55 }
  0xdf   : > { %253 = vadd.xlane.f32.xlu2 %v840_v56 }
 0x149   : > { %v289_v57 = vpop.xlane.xlu0 %288 }
 0x14a   : > { %v219_v58 = vpop.xlane.xlu2 %218  ;;  %548 = vrcp.f32 %v289_v57  ;;  %vm295_vm3 = vweird.f32 %v289_v57  ;;  %v301_v14 = vand.u32 2147483648, %v289_v57  ;;  %v299_v21 = vand.u32 2147483647, %v289_v57 }
 0x14b   : > { %550 = vrcp.f32 %v219_v58  ;;  %v231_v4 = vand.u32 2147483648, %v219_v58  ;;  %vm225_vm1 = vweird.f32 %v219_v58  ;;  %v229_v7 = vand.u32 2147483647, %v219_v58 }
 0x14c   : > { %v302_v32 = vor.u32 1.1754944e-38, %v301_v14  ;;  %vm300_vm13 = vcmp.eq.f32.partialorder %v299_v21, 8.507059e+37 }
 0x14d   : > { %v232_v13 = vor.u32 1.1754944e-38, %v231_v4  ;;  %vm230_vm4 = vcmp.eq.f32.partialorder %v229_v7, 8.507059e+37 }
 0x150   : > { %v549_v59 = vpop.eup %548 }
 0x151   : > { %v551_v60 = vpop.eup %550  ;;  %v291_v61 = vmul.f32 %v549_v59, %v289_v57  ;;  %v324_v62 = vpop.xlane.xlu1 %323  ;;  %vm296_vm5 = vweird.f32 %v549_v59 }
 0x152   : > { %v221_v63 = vmul.f32 %v551_v60, %v219_v58  ;;  %552 = vrcp.f32 %v324_v62  ;;  %v254_v0 = vpop.xlane.xlu2 %253  ;;  %vm226_vm0 = vweird.f32 %v551_v60  ;;  %vm845_vm8 = vmor %vm295_vm3, %vm296_vm5  ;;  %vm330_vm9 = vweird.f32 %v324_v62 }
 0x153   : > { %554 = vrcp.f32 %v254_v0  ;;  %v292_v2 = vsub.f32 1.0, %v291_v61  ;;  %vm227_vm2 = vmor %vm225_vm1, %vm226_vm0  ;;  %v266_v20 = vand.u32 2147483648, %v254_v0  ;;  %v264_v23 = vand.u32 2147483647, %v254_v0 }
 0x154   : > { %v222_v1 = vsub.f32 1.0, %v221_v63  ;;  %v334_v26 = vand.u32 2147483647, %v324_v62  ;;  %v336_v27 = vand.u32 2147483648, %v324_v62  ;;  %vm260_vm11 = vweird.f32 %v254_v0 }
 0x155   : > { %v293_v8 = vmul.f32 %v549_v59, %v292_v2  ;;  %v267_v33 = vor.u32 1.1754944e-38, %v266_v20  ;;  %vm265_vm14 = vcmp.eq.f32.partialorder %v264_v23, 8.507059e+37 }
 0x156   : > { %v223_v3 = vmul.f32 %v551_v60, %v222_v1  ;;  %v337_v37 = vor.u32 1.1754944e-38, %v336_v27  ;;  %vm335_vm15 = vcmp.eq.f32.partialorder %v334_v26, 8.507059e+37 }
 0x157   : > { %v294_v16 = vadd.f32 %v549_v59, %v293_v8 }
 0x158   : > { %v553_v5 = vpop.eup %552  ;;  %v224_v6 = vadd.f32 %v551_v60, %v223_v3 }
 0x159   : > { %v555_v9 = vpop.eup %554  ;;  %v326_v10 = vmul.f32 %v553_v5, %v324_v62  ;;  %vm331_vm6 = vweird.f32 %v553_v5  ;;  %v298_v29 = vsel %vm845_vm8, %v549_v59, %v294_v16 }
 0x15a   : > { %v228_v11 = vsel %vm227_vm2, %v551_v60, %v224_v6  ;;  %v256_v12 = vmul.f32 %v555_v9, %v254_v0  ;;  %vm261_vm7 = vweird.f32 %v555_v9  ;;  %vm851_vm10 = vmor %vm330_vm9, %vm331_vm6  ;;  %v303_v36 = vsel %vm300_vm13, %v302_v32, %v298_v29 }
 0x15b   : > { %v327_v15 = vsub.f32 1.0, %v326_v10  ;;  %v233_v18 = vsel %vm230_vm4, %v232_v13, %v228_v11  ;;  %vm262_vm12 = vmor %vm260_vm11, %vm261_vm7  ;;  %v305_v42 = vmul.f32 %v835_v51, %v303_v36 }
 0x15c   : > { %v257_v17 = vsub.f32 1.0, %v256_v12  ;;  %v235_v28 = vmul.f32 %v543_v53, %v233_v18 }
 0x15d   : > { %v328_v19 = vmul.f32 %v553_v5, %v327_v15 }
 0x15e   : > { %v258_v22 = vmul.f32 %v555_v9, %v257_v17  ;;  %v236_v39 = vmax.f32 %v235_v28, 0.0 }
 0x15f   : > { %v329_v25 = vadd.f32 %v553_v5, %v328_v19 }
 0x160   : > { %v259_v31 = vadd.f32 %v555_v9, %v258_v22 }
 0x161   : > { %v333_v34 = vsel %vm851_vm10, %v553_v5, %v329_v25 }
 0x162   : > { %v263_v35 = vsel %vm262_vm12, %v555_v9, %v259_v31  ;;  %v338_v41 = vsel %vm335_vm15, %v337_v37, %v333_v34 }
 0x163   : > { %v268_v38 = vsel %vm265_vm14, %v267_v33, %v263_v35  ;;  %v340_v44 = vmul.f32 %v838_v55, %v338_v41 }
 0x164   : > { %v270_v40 = vmul.f32 %v840_v56, %v268_v38 }
 0x166   : > { %v271_v43 = vmax.f32 %v236_v39, %v270_v40 }
 0x168   : > { %v306_v45 = vmax.f32 %v271_v43, %v305_v42 }
 0x16a   : > { %v341_v46 = vmax.f32 %v306_v45, %v340_v44 }
 0x16c   : > { %342 = vst [vmem:[%s201_s13] sm:$0xff] %v341_v46 }
 0x16d   : > { %643 = shalt.err (!%p640_p2)
}
 0x16e   : > { %474 = dma.vmem_to_hbm [thread:$0]  (%p755_p10), %s357_s29, 128, %s359_s3, %s344_s8  }
 0x16f PF: > { %p488_p3 = scmp.ge.s32.totalorder %s686_s12, 2  ;;  %s370_s27 = sand.u32 1, %s674_s9  }
 0x170   : > { %s371_s17 = scalar_lea.sflag [#allocation4], %s370_s27 }
 0x171   : > { %p484_p4 = pnand %p488_p3, %p759_p11 }
 0x173   : > { %p485_p5 = pneg %p484_p4 }
 0x175   : > { %669 = dma.done.wait (%p485_p5), %s371_s17, 128  }
 0x176   : > { %671 = vsyncadd (%p485_p5), %s371_s17, 4294967168  ;;  %p18_p7 = scmp.ge.s32.totalorder %s731_s15, 5   ;;  %s907_s9 = smov %s678_s10 }
 0x177   : > { %s908_s10 = smov %s682_s11  ;;  %s909_s11 = smov %s743_s18 }
 0x178   : > { %s910_s12 = smov %s731_s15  ;;  %20 = sbr.rel (!%p18_p7) target bundleno = 7 (0x7), region = 89 }
 0x17d   :  { %377 = vsyncpa [#allocation3], 1 }
 0x17e   :  { %379 = vsyncpa [#allocation3 + $0x1], 1 }
 0x17f   :  { %380 = vsyncpa [#allocation6], 1 }
 0x180   :  { %382 = vsyncpa [#allocation6 + $0x1], 1 }
 0x181   :  { %383 = vsyncpa [#allocation4], 1 }
 0x182   :  { %385 = vsyncpa [#allocation4 + $0x1], 1 }

</bundles_post_ra>
